<compile_context>
chip_gen: v7x
topology: tpu7x:2x2x1
jax: 0.10.0
libtpu: 0.0.40
codegen_flags: <defaults>
</compile_context>

<pallas_src>
import math

import jax
import jax.numpy as jnp
from jax.experimental import pallas as pl
from jax.experimental.pallas import tpu as pltpu

_LANE = 128
_ROW_BIAS_MAX_BYTES = 32 * 1024 * 1024  # max size of the repeated (1, C*H*W) bias row


def _vmem_budget():
    """(per-block byte budget, vmem_limit_bytes or None) for the local TPU gen."""
    try:
        kind = jax.devices()[0].device_kind.lower()
    except Exception:
        kind = ""
    if "v7" in kind or "tpu7" in kind:
        # 64 MiB physical VMEM: big blocks, but budgeted against 64 MiB.
        return 6 * 1024 * 1024, 40 * 1024 * 1024
    if "v5" in kind or "v6" in kind:
        # 128 MiB physical VMEM: 8 MiB blocks, 64 MiB scoped limit.
        return 8 * 1024 * 1024, 64 * 1024 * 1024
    return 4 * 1024 * 1024, None  # unknown chip: conservative, keep default limit


def _bias_add_kernel(x_ref, b_ref, o_ref):
    # b is (1, tc) (broadcast along sublanes) or (tr, 1) (broadcast along lanes).
    # jnp promotion inside the kernel matches PyTorch's x + bias promotion.
    o_ref[...] = (x_ref[...] + b_ref[...]).astype(o_ref.dtype)


def _pick_tiles(R, Cdim, itemsize, budget):
    """Choose an (8,128)-legal (tr, tc) block of roughly `budget` bytes."""
    # Dtype-aware sublane rounding: 8 rows f32, 16 bf16/f16, 32 int8/fp8.
    sub = 8 * max(1, 4 // max(1, itemsize))
    # Lane (last) dim: full extent when it fits the budget at minimal sublane
    # depth, otherwise a multiple of 128 (pl.cdiv gives a masked tail block).
    if Cdim * sub * itemsize <= budget:
        tc = Cdim
    else:
        tc = max(_LANE, ((budget // (sub * itemsize)) // _LANE) * _LANE)
    # Sublane (row) dim from the budget.  Account for lane padding: blocks
    # narrower than 128 lanes still occupy 128 lanes of VMEM per row.
    padded_cols = -(-tc // _LANE) * _LANE
    rows_budget = budget // max(1, padded_cols * itemsize)
    rows_budget = max(sub, (rows_budget // sub) * sub)
    tr = R if R <= rows_budget else rows_budget
    # Megacore / pipeline: avoid a single-block grid for medium+ arrays so both
    # v7x TensorCores (and the double-buffered DMA pipeline) have work.
    if tr >= R and tc >= Cdim and R * Cdim * itemsize > (1 << 20):
        if R > 2 * sub:
            tr = max(sub, ((-(-R // 4)) // sub) * sub)        # ~4 row blocks
        elif Cdim >= 2 * _LANE:
            tc = max(_LANE, ((-(-Cdim // 4)) // _LANE) * _LANE)  # split lanes instead
    return tr, tc


def _bias_add_2d(x2d, b2d, out_dtype):
    """x2d: (R, Cdim); b2d: (1, Cdim) row bias or (R, 1) per-row (column) bias."""
    R, Cdim = x2d.shape
    itemsize = jnp.dtype(x2d.dtype).itemsize
    budget, vmem_limit = _vmem_budget()
    tr, tc = _pick_tiles(R, Cdim, itemsize, budget)

    col_bias = (b2d.shape[0] == R and b2d.shape[1] == 1 and R > 1)
    if col_bias:
        # A (tr, 1) bias block pads to (tr, 128) lanes in VMEM (128x logical
        # size): cap tr so the double-buffered bias stays ~1 MiB per buffer.
        if R > 2048:
            tr = min(tr, 2048)
        b_spec = pl.BlockSpec((tr, 1), lambda i, j: (i, 0))
    else:
        b_spec = pl.BlockSpec((1, tc), lambda i, j: (0, j))

    grid = (pl.cdiv(R, tr), pl.cdiv(Cdim, tc))

    cp = dict(dimension_semantics=("parallel", "parallel"))
    if vmem_limit is not None:
        cp["vmem_limit_bytes"] = vmem_limit

    return pl.pallas_call(
        _bias_add_kernel,
        out_shape=jax.ShapeDtypeStruct((R, Cdim), out_dtype),
        grid_spec=pltpu.PrefetchScalarGridSpec(
            num_scalar_prefetch=0,
            grid=grid,
            in_specs=[pl.BlockSpec((tr, tc), lambda i, j: (i, j)), b_spec],
            out_specs=pl.BlockSpec((tr, tc), lambda i, j: (i, j)),
        ),
        compiler_params=pltpu.CompilerParams(**cp),
    )(x2d, b2d)


def add_biases(x, bias):
    """Equivalent of AddBiases.forward.

    bias: per-channel bias, shape (C,), (C, 1) or (1, C).
    x:    (N, C) or (N, C, H, W) (NCHW, as in PyTorch).
    """
    bias = jnp.asarray(bias).reshape(-1)
    C = bias.shape[0]
    out_dtype = jnp.result_type(x.dtype, bias.dtype)

    if x.ndim == 2:
        R, Cx = x.shape
        assert Cx == C, f"channel mismatch: {Cx} vs {C}"
        if C % _LANE == 0:
            # Already lane-dense.
            return _bias_add_2d(x, bias.reshape(1, C), out_dtype)
        # Lane-fold small C: view (rows, C) as (rows*C//L, L), L = lcm(C, 128);
        # bias repeats with period C along the L-wide lane axis.
        L = (C * _LANE) // math.gcd(C, _LANE)
        fold = L // C  # rows consumed per folded lane-row
        brow_f = jnp.tile(bias, fold).reshape(1, L)
        R0 = (R // fold) * fold  # largest foldable prefix
        if R0 == R:
            y = _bias_add_2d(x.reshape(R * C // L, L), brow_f, out_dtype)
            return y.reshape(R, C)
        if R0 == 0:
            # Tiny input (< fold rows): direct lane-width-C path, cost irrelevant.
            return _bias_add_2d(x, bias.reshape(1, C), out_dtype)
        # Fold the large prefix lane-dense; only the < fold leftover rows go
        # through a tiny lane-width-C call (never the whole array).
        y_main = _bias_add_2d(x[:R0].reshape(R0 * C // L, L), brow_f, out_dtype)
        y_tail = _bias_add_2d(x[R0:], bias.reshape(1, C), out_dtype)
        return jnp.concatenate([y_main.reshape(R0, C), y_tail], axis=0)

    elif x.ndim == 4:
        N, Cx, H, W = x.shape
        assert Cx == C, f"channel mismatch: {Cx} vs {C}"
        HW = H * W
        row_bytes = C * HW * jnp.dtype(bias.dtype).itemsize
        if row_bytes <= _ROW_BIAS_MAX_BYTES or N * C == 1:
            # Row-bias layout: NCHW viewed (zero-copy) as (N, C*H*W) plus a
            # (1, C*H*W) repeated-bias row -> lane-dense stores even for small
            # H*W, sublane-cheap bias broadcast, no padded (tr,1) bias block.
            x2 = x.reshape(N, C * HW)
            brow = jnp.repeat(bias, HW).reshape(1, C * HW)
            return _bias_add_2d(x2, brow, out_dtype).reshape(N, C, H, W)
        # Fallback for extreme C*H*W (repeated bias row would exceed 32 MiB):
        # (N*C, H*W) slab with a per-row bias column (tr capped inside).
        x2 = x.reshape(N * C, HW)
        bcol = jnp.tile(bias, N).reshape(N * C, 1)
        return _bias_add_2d(x2, bcol, out_dtype).reshape(N, C, H, W)

    # TODO(synk): ranks other than 2/4 are not produced by the PyTorch module.
    raise ValueError(f"Unsupported input rank: {x.ndim} (expected 2 or 4)")


if __name__ == "__main__":
    key = jax.random.PRNGKey(0)
    k_bias, k_x4, k_x2a, k_x2b, k_x2c, k_xc, k_bc = jax.random.split(key, 7)

    N, C, H, W = 2, 4, 16, 16
    bias = jax.random.normal(k_bias, (C,), dtype=jnp.float32)

    # 4-D NCHW path: (N, C*H*W) row-bias layout, lane-dense.
    x4 = jax.random.normal(k_x4, (N, C, H, W), dtype=jnp.float32)
    y4 = jax.block_until_ready(add_biases(x4, bias))
    ref4 = x4 + bias.reshape(1, C, 1, 1)
    assert y4.shape == x4.shape and y4.dtype == ref4.dtype
    assert jnp.allclose(y4, ref4, atol=1e-6), "4D bias add mismatch"

    # 2-D, fully lane-foldable (R divisible by 128 // gcd(C, 128)).
    x2a = jax.random.normal(k_x2a, (64, C), dtype=jnp.float32)
    y2a = jax.block_until_ready(add_biases(x2a, bias))
    assert y2a.shape == x2a.shape
    assert jnp.allclose(y2a, x2a + bias.reshape(1, C), atol=1e-6), "2D folded mismatch"

    # 2-D, foldable prefix + small leftover tail.
    x2b = jax.random.normal(k_x2b, (70, C), dtype=jnp.float32)
    y2b = jax.block_until_ready(add_biases(x2b, bias))
    assert y2b.shape == x2b.shape
    assert jnp.allclose(y2b, x2b + bias.reshape(1, C), atol=1e-6), "2D prefix+tail mismatch"

    # 2-D, tiny non-foldable input (direct path).
    x2c = jax.random.normal(k_x2c, (6, C), dtype=jnp.float32)
    y2c = jax.block_until_ready(add_biases(x2c, bias))
    assert jnp.allclose(y2c, x2c + bias.reshape(1, C), atol=1e-6), "2D direct mismatch"

    # Column-bias fallback layout (used only for extreme C*H*W): exercise the
    # kernel path directly at a small shape to keep it compile-tested.
    xc = jax.random.normal(k_xc, (16, 256), dtype=jnp.float32)
    bc = jax.random.normal(k_bc, (16, 1), dtype=jnp.float32)
    yc = jax.block_until_ready(_bias_add_2d(xc, bc, jnp.float32))
    assert jnp.allclose(yc, xc + bc, atol=1e-6), "column-bias path mismatch"

    print("KERNEL_OK")
</pallas_src>

<mosaic_0001>
module attributes {stable_mosaic.version = 11 : i64} {
  func.func @_bias_add_kernel(%arg0: i32, %arg1: i32, %arg2: memref<2x1024xf32, #tpu.memory_space<vmem>>, %arg3: memref<1x1024xf32, #tpu.memory_space<vmem>>, %arg4: memref<2x1024xf32, #tpu.memory_space<vmem>>) attributes {dimension_semantics = [#tpu.dimension_semantics<parallel>, #tpu.dimension_semantics<parallel>], iteration_bounds = array<i64: 1, 1>, scalar_prefetch = 0 : i64, scratch_operands = 0 : i64, tpu.core_type = #tpu.core_type<tc>, window_params = [{transform_indices = @transform_0, window_bounds = array<i64: 2, 1024>}, {transform_indices = @transform_1, window_bounds = array<i64: 1, 1024>}, {transform_indices = @transform_2, window_bounds = array<i64: 2, 1024>}]} {
    %c0 = arith.constant 0 : index
    %c0_0 = arith.constant 0 : index
    %0 = vector.load %arg2[%c0, %c0_0] : memref<2x1024xf32, #tpu.memory_space<vmem>>, vector<2x1024xf32>
    %c0_1 = arith.constant 0 : index
    %c0_2 = arith.constant 0 : index
    %1 = vector.load %arg3[%c0_1, %c0_2] : memref<1x1024xf32, #tpu.memory_space<vmem>>, vector<1x1024xf32>
    %2 = vector.broadcast %1 : vector<1x1024xf32> to vector<2x1024xf32>
    %3 = arith.addf %0, %2 : vector<2x1024xf32>
    %c0_3 = arith.constant 0 : index
    %c0_4 = arith.constant 0 : index
    %4 = vector.load %arg4[%c0_3, %c0_4] : memref<2x1024xf32, #tpu.memory_space<vmem>>, vector<2x1024xf32>
    tpu.vector_store %arg4[%c0_3, %c0_4], %3 {strides = array<i32>} : memref<2x1024xf32, #tpu.memory_space<vmem>>, vector<2x1024xf32>,
    return
  }
  func.func @transform_0(%arg0: i32, %arg1: i32) -> (i32, i32) {
    %c0_i32 = arith.constant 0 : i32
    return %arg0, %arg1 : i32, i32
  }
  func.func @transform_1(%arg0: i32, %arg1: i32) -> (i32, i32) {
    %c0_i32 = arith.constant 0 : i32
    %c0_i32_0 = arith.constant 0 : i32
    return %c0_i32, %arg1 : i32, i32
  }
  func.func @transform_2(%arg0: i32, %arg1: i32) -> (i32, i32) {
    %c0_i32 = arith.constant 0 : i32
    return %arg0, %arg1 : i32, i32
  }
}

</mosaic_0001>

<bundles_post_ra>
// kernel: tpu_custom_call.1
= control target key start
LH: loop header
LB: loop body
LE: loop exit
PB: predicated region body
PF: predicated region fallthrough
CT: control target
= control target key end

     0   :  { %7 = vsyncpa [#allocation3], 0  ;;  %s259_s0 = inlined_call_operand.hbm [shape: f32[2,1024], index: 0, kind: input, shape index: {}]   ;;  %s260_s1 = inlined_call_operand.hbm [shape: f32[1,1024], index: 1, kind: input, shape index: {}]   ;;  %s261_s2 = inlined_call_operand.hbm [shape: f32[2,1024], index: 2, kind: output, shape index: {}]  }
   0x1   :  { %8 = vsyncpa [#allocation6], 0 }
   0x2   :  { %9 = vsyncpa [#allocation4], 0  ;;  %s204_s9 = smov [#allocation2]   ;;  %s205_s11 = smov [#allocation5]  }
   0x3   :  { %s16_s10 = sshll.u32 %s204_s9, 4  ;;  %s26_s12 = sshll.u32 %s205_s11, 4  ;;  %s17_s10 = int_to_ptr.vmem [resolvable:$true] %s16_s10  ;;  %s27_s12 = int_to_ptr.vmem [resolvable:$true] %s26_s12 }
   0x4   :  { %s132_s15 = scalar_lea.hbm %s259_s0, 256 }
   0x5   :  { %p133_p0 = scmp.ne.s32.totalorder %s259_s0, %s132_s15  ;;  %p136_p1 = scmp.lt.u32.totalorder %s132_s15, %s259_s0 }
   0x7   :  { %p138_p2 = pnand %p136_p1, %p133_p0 }
   0x9   :  { %141 = shalt.err (!%p138_p2)
}
   0xa   :  { %s142_s20 = scalar_lea.vmem %s17_s10, 256  ;;  %p147_p4 = scmp.lt.s32.totalorder %s17_s10, %s17_s10 }
   0xb   :  { %p143_p3 = scmp.ne.s32.totalorder %s17_s10, %s142_s20  ;;  %p148_p5 = scmp.lt.s32.totalorder %s142_s20, %s142_s20 }
   0xd   :  { %p149_p6 = por %p148_p5, %p147_p4 }
   0xf   :  { %p150_p7 = pnand %p149_p6, %p143_p3 }
  0x11   :  { %153 = shalt.err (!%p150_p7)
}
  0x12   :  { %19 = dma.hbm_to_vmem [thread:$0]  %s259_s0, 256, %s17_s10, [#allocation3]  }
  0x13   :  { %s154_s25 = scalar_lea.hbm %s260_s1, 128 }
  0x14   :  { %p155_p8 = scmp.ne.s32.totalorder %s260_s1, %s154_s25  ;;  %p158_p9 = scmp.lt.u32.totalorder %s154_s25, %s260_s1 }
  0x16   :  { %p160_p10 = pnand %p158_p9, %p155_p8 }
  0x18   :  { %163 = shalt.err (!%p160_p10)
}
  0x19   :  { %s164_s30 = scalar_lea.vmem %s27_s12, 128  ;;  %p169_p12 = scmp.lt.s32.totalorder %s27_s12, %s27_s12 }
  0x1a   :  { %p165_p11 = scmp.ne.s32.totalorder %s27_s12, %s164_s30  ;;  %p170_p13 = scmp.lt.s32.totalorder %s164_s30, %s164_s30 }
  0x1c   :  { %p171_p0 = por %p170_p13, %p169_p12 }
  0x1e   :  { %p172_p1 = pnand %p171_p0, %p165_p11 }
  0x20   :  { %175 = shalt.err (!%p172_p1)
}
  0x21   :  { %29 = dma.hbm_to_vmem [thread:$0]  %s260_s1, 128, %s27_s12, [#allocation6]  }
  0x22   :  { %198 = dma.done.wait [#allocation3], 256  }
  0x23   :  { %199 = vsyncadd [#allocation3], 4294967040 }
  0x24   :  { %200 = dma.done.wait [#allocation6], 128  }
  0x25   :  { %201 = vsyncadd [#allocation6], 4294967168  ;;  %v40_v0 = vlaneseq  ;;  %v206_v1 = vmov 1983009808   ;;  %v38_v13 = vld [vmem:[#allocation5] sm:$0xff]  ;;  %v36_v29 = vld [vmem:[#allocation2] sm:$0xff] }
  0x26   :  { %v75_v2 = vunpack.c.l.s4 %v206_v1  ;;  %v37_v33 = vld [vmem:[#allocation2 + $0x8] sm:$0xff]  ;;  %s207_s1 = smov [#allocation7]  }
  0x27   :  { %v41_v3 = vshrl.u32 %v40_v0, 7  ;;  %s118_s4 = sshll.u32 %s207_s1, 4  ;;  %s119_s4 = int_to_ptr.vmem [resolvable:$true] %s118_s4 }
  0x28   :  { %v76_v4 = vunpack.c.0.s8 %v75_v2  ;;  %s176_s5 = scalar_lea.vmem %s119_s4, 256  ;;  %p181_p3 = scmp.lt.s32.totalorder %s119_s4, %s119_s4 }
  0x29   :  { %v42_v5 = vsub.s32 0, %v41_v3  ;;  %v46_v6 = vsub.s32 1, %v41_v3  ;;  %v50_v7 = vsub.s32 2, %v41_v3  ;;  %v54_v8 = vsub.s32 3, %v41_v3  ;;  %p177_p2 = scmp.ne.s32.totalorder %s119_s4, %s176_s5  ;;  %p182_p4 = scmp.lt.s32.totalorder %s176_s5, %s176_s5 }
  0x2a   :  { %v58_v9 = vsub.s32 4, %v41_v3  ;;  %v62_v10 = vsub.s32 5, %v41_v3  ;;  %v66_v11 = vsub.s32 6, %v41_v3  ;;  %v70_v12 = vsub.s32 7, %v41_v3 }
  0x2b   :  { %v79_v14 = vsub.s32 %v76_v4, %v41_v3  ;;  %v43_v15 = vrot.slane %v38_v13, %v42_v5  ;;  %v47_v16 = vrot.slane %v38_v13, %v46_v6  ;;  %v51_v17 = vrot.slane %v38_v13, %v50_v7  ;;  %p183_p5 = por %p182_p4, %p181_p3 }
  0x2c   :  { %v55_v18 = vrot.slane %v38_v13, %v54_v8  ;;  %v59_v19 = vrot.slane %v38_v13, %v58_v9  ;;  %v63_v20 = vrot.slane %v38_v13, %v62_v10  ;;  %v67_v21 = vrot.slane %v38_v13, %v66_v11 }
  0x2d   :  { %v71_v22 = vrot.slane %v38_v13, %v70_v12  ;;  %v72_v23 = vcombine.low %v43_v15, %v47_v16  ;;  %p184_p6 = pnand %p183_p5, %p177_p2 }
  0x2e   :  { %v73_v24 = vcombine.low %v51_v17, %v55_v18  ;;  %v89_v25 = vcombine.low %v59_v19, %v63_v20 }
  0x2f   :  { %v90_v26 = vcombine.low %v67_v21, %v71_v22  ;;  %v80_v27 = vrot.slane %v72_v23, %v79_v14 }
  0x30   :  { %v87_v28 = vrot.slane %v73_v24, %v79_v14  ;;  %v97_v30 = vrot.slane %v89_v25, %v79_v14 }
  0x31   :  { %v104_v31 = vrot.slane %v90_v26, %v79_v14 }
  0x32   :  { %v88_v32 = vcombine.low %v80_v27, %v87_v28 }
  0x33   :  { %v105_v34 = vcombine.low %v97_v30, %v104_v31 }
  0x34   :  { %v108_v35 = vadd.f32 %v88_v32, %v36_v29 }
  0x35   :  { %v109_v36 = vadd.f32 %v105_v34, %v37_v33 }
  0x36   :  { %110 = vst [vmem:[#allocation7] sm:$0xff] %v108_v35 }
  0x37   :  { %111 = vst [vmem:[#allocation7 + $0x8] sm:$0xff] %v109_v36 }
  0x38   :  { %187 = shalt.err (!%p184_p6)
}
  0x39   :  { %s188_s8 = scalar_lea.hbm %s261_s2, 256 }
  0x3a   :  { %p189_p7 = scmp.ne.s32.totalorder %s261_s2, %s188_s8  ;;  %p192_p8 = scmp.lt.u32.totalorder %s188_s8, %s261_s2 }
  0x3c   :  { %p194_p9 = pnand %p192_p8, %p189_p7 }
  0x3e   :  { %197 = shalt.err (!%p194_p9)
}
  0x3f   :  { %121 = dma.vmem_to_hbm [thread:$0]  %s119_s4, 256, %s261_s2, [#allocation4]  }
  0x40   :  { %202 = dma.done.wait [#allocation4], 256  }
  0x41   :  { %203 = vsyncadd [#allocation4], 4294967040 }
  0x42   :  { %125 = vsyncpa [#allocation3], 1 }
  0x43   :  { %126 = vsyncpa [#allocation6], 1 }
  0x44   :  { %127 = vsyncpa [#allocation4], 1 }

</bundles_post_ra>
